<compile_context>
chip_gen: v7x
topology: tpu7x:2x2x1
jax: 0.10.0
libtpu: 0.0.40
codegen_flags: <defaults>
</compile_context>

<pallas_src>
import functools
import math

import jax
import jax.numpy as jnp
from jax.experimental import pallas as pl
from jax.experimental.pallas import tpu as pltpu


def _round_up(x: int, m: int) -> int:
    return (x + m - 1) // m * m


def _vmem_capacity_bytes() -> int:
    try:
        cap = getattr(pltpu.get_tpu_info(), "vmem_capacity_bytes", None)
        if cap:
            return int(cap)
    except Exception:
        pass
    return 64 * 1024 * 1024  # conservative fallback (v7x per-TC size)


def _detection_head_kernel(x_ref, w_inc_ref, b_inc_ref, w_head_ref, b_head_ref,
                           o_ref, *, det_dim: int, head_dim: int,
                           seg_tanh: bool, compute_dtype):
    # Inception module: Linear + ReLU.  Operands kept in their native dtype
    # (native single-pass MXU when bf16), accumulation in f32.
    h = jnp.dot(x_ref[...], w_inc_ref[...], preferred_element_type=jnp.float32)
    h = jnp.maximum(h + b_inc_ref[...].astype(jnp.float32), 0.0)
    # obj / loc / classification (/ seg) heads fused into one wide matmul.
    y = jnp.dot(h.astype(compute_dtype), w_head_ref[...],
                preferred_element_type=jnp.float32)
    y = y + b_head_ref[...].astype(jnp.float32)
    if seg_tanh:
        # tanh only on the trailing seg lanes of every packed sub-block.
        # (1, D) iota -> cheap compare; tanh itself rides the EUP slot.
        lane = jax.lax.broadcasted_iota(jnp.int32, (1, y.shape[-1]), 1)
        y = jnp.where((lane % head_dim) >= det_dim, jnp.tanh(y), y)
    o_ref[...] = y.astype(o_ref.dtype)


def detection_head(x, w_inc, b_inc, w_obj, b_obj, w_loc, b_loc, w_cls, b_cls,
                   w_seg=None, b_seg=None, *, row_tile=1024):
    """Fused DetectionHead forward.  Weights in (in_features, out_features) layout."""
    *lead, embed_dim = x.shape
    assert w_inc.shape == (embed_dim, embed_dim)

    head_ws = [w_obj, w_loc, w_cls]
    head_bs = [b_obj, b_loc, b_cls]
    det_dim = 1 + w_loc.shape[1] + w_cls.shape[1]
    seg = w_seg is not None
    if seg:
        head_ws.append(w_seg)
        head_bs.append(b_seg)
    w_head = jnp.concatenate(head_ws, axis=1)            # (E, D)
    b_head = jnp.concatenate(head_bs, axis=0)            # (D,)
    out_dim = w_head.shape[1]

    rows = math.prod(lead) if lead else 1
    x2 = x.reshape(rows, embed_dim)

    # ---- Lane packing: make loads, matmul N-dims and output stores 128-lane dense.
    pack = 1
    if embed_dim <= 128 and 128 % embed_dim == 0:
        pack = 128 // embed_dim
        while pack > 1 and rows % pack != 0:             # pack must divide rows
            pack //= 2
    if pack > 1:
        x2 = x2.reshape(rows // pack, pack * embed_dim)  # byte-identical view
        w_inc_p = jnp.kron(jnp.eye(pack, dtype=w_inc.dtype), w_inc)      # block-diag
        w_head_p = jnp.kron(jnp.eye(pack, dtype=w_head.dtype), w_head)   # block-diag
        b_inc_p = jnp.tile(b_inc, pack)
        b_head_p = jnp.tile(b_head, pack)
    else:
        w_inc_p, w_head_p, b_inc_p, b_head_p = w_inc, w_head, b_inc, b_head

    ep = pack * embed_dim
    dp = pack * out_dim
    prows = rows // pack
    b_inc_p = b_inc_p.reshape(1, ep)
    b_head_p = b_head_p.reshape(1, dp)

    # ---- Tile selection (in packed rows).
    x_isz = jnp.dtype(x.dtype).itemsize
    w_isz = jnp.dtype(w_inc_p.dtype).itemsize
    sub = max(8, 32 // x_isz)                            # 8 f32 / 16 bf16 / 32 int8

    if prows <= sub:
        ptile = prows                                    # full-extent block (allowed)
    else:
        ptile = _round_up(min(max(row_tile // pack, sub), prows), sub)
        # Keep >= ~4 grid steps so v7x's two TensorCores both get work.
        ptile = max(sub, min(ptile, _round_up(pl.cdiv(prows, 4), sub)))
        # Per-generation VMEM budget.  Weights/biases ARE double-buffered by
        # BlockSpec; the f32 intermediates h / y are not pipeline buffers.
        budget = int(_vmem_capacity_bytes() * 0.45)
        weight_bytes = w_isz * (ep * ep + ep * dp + ep + dp)

        def vmem_use(t):
            pipe = 2 * t * (ep + dp) * x_isz             # dbl-buffered x-in + y-out
            interm = t * (ep + dp) * 4                   # f32 h and y
            return 2 * weight_bytes + pipe + interm

        while ptile > sub and vmem_use(ptile) > budget:
            ptile = max(sub, _round_up(ptile // 2, sub))

    grid = (pl.cdiv(prows, ptile),)
    vmem_limit = max(32 * 1024 * 1024,
                     min(int(_vmem_capacity_bytes() * 0.75), 96 * 1024 * 1024))

    kernel = functools.partial(_detection_head_kernel, det_dim=det_dim,
                               head_dim=out_dim, seg_tanh=seg,
                               compute_dtype=x.dtype)

    out = pl.pallas_call(
        kernel,
        out_shape=jax.ShapeDtypeStruct((prows, dp), x.dtype),
        grid_spec=pltpu.PrefetchScalarGridSpec(
            num_scalar_prefetch=0,
            grid=grid,
            in_specs=[
                pl.BlockSpec((ptile, ep), lambda i: (i, 0)),   # packed x rows
                pl.BlockSpec((ep, ep), lambda i: (0, 0)),      # W_inc (fetched once)
                pl.BlockSpec((1, ep), lambda i: (0, 0)),       # b_inc
                pl.BlockSpec((ep, dp), lambda i: (0, 0)),      # fused head weights
                pl.BlockSpec((1, dp), lambda i: (0, 0)),       # fused head bias
            ],
            out_specs=pl.BlockSpec((ptile, dp), lambda i: (i, 0)),
        ),
        compiler_params=pltpu.CompilerParams(
            dimension_semantics=("parallel",),
            vmem_limit_bytes=vmem_limit,
        ),
    )(x2, w_inc_p, b_inc_p, w_head_p, b_head_p)

    # Packed (prows, pack*out_dim) is byte-identical to (rows, out_dim).
    return out.reshape(*lead, out_dim)


if __name__ == "__main__":
    # Small shapes consistent with the module's forward.
    N, max_objs, embed_dim = 2, 8, 32
    num_obj_class = 7
    det_3d = True
    num_seg_coefs = 16
    loc_dim = 8 if det_3d else 4

    key = jax.random.PRNGKey(0)
    keys = jax.random.split(key, 11)
    s = 1.0 / math.sqrt(embed_dim)
    x = jax.random.normal(keys[0], (N, max_objs, embed_dim), jnp.float32)
    w_inc = jax.random.normal(keys[1], (embed_dim, embed_dim), jnp.float32) * s
    b_inc = jax.random.normal(keys[2], (embed_dim,), jnp.float32) * s
    w_obj = jax.random.normal(keys[3], (embed_dim, 1), jnp.float32) * s
    b_obj = jax.random.normal(keys[4], (1,), jnp.float32) * s
    w_loc = jax.random.normal(keys[5], (embed_dim, loc_dim), jnp.float32) * s
    b_loc = jax.random.normal(keys[6], (loc_dim,), jnp.float32) * s
    w_cls = jax.random.normal(keys[7], (embed_dim, num_obj_class), jnp.float32) * s
    b_cls = jax.random.normal(keys[8], (num_obj_class,), jnp.float32) * s
    w_seg = jax.random.normal(keys[9], (embed_dim, num_seg_coefs), jnp.float32) * s
    b_seg = jax.random.normal(keys[10], (num_seg_coefs,), jnp.float32) * s

    out = detection_head(x, w_inc, b_inc, w_obj, b_obj, w_loc, b_loc,
                         w_cls, b_cls, w_seg, b_seg)
    jax.block_until_ready(out)

    # Plain-JAX reference of the PyTorch forward.
    p_hi = jax.lax.Precision.HIGHEST
    h = jnp.maximum(jnp.matmul(x, w_inc, precision=p_hi) + b_inc, 0.0)
    ref = jnp.concatenate([
        jnp.matmul(h, w_obj, precision=p_hi) + b_obj,
        jnp.matmul(h, w_loc, precision=p_hi) + b_loc,
        jnp.matmul(h, w_cls, precision=p_hi) + b_cls,
        jnp.tanh(jnp.matmul(h, w_seg, precision=p_hi) + b_seg),
    ], axis=-1)

    expected = (N, max_objs, 1 + loc_dim + num_obj_class + num_seg_coefs)
    assert out.shape == ref.shape == expected
    # Tolerance covers MXU bf16-pass precision vs XLA HIGHEST-precision reference.
    assert jnp.allclose(out, ref, atol=2e-2, rtol=2e-2), "mismatch vs reference"

    print("KERNEL_OK")
</pallas_src>

<mosaic_0001>
module attributes {stable_mosaic.version = 11 : i64} {
  func.func @_detection_head_kernel(%arg0: i32, %arg1: memref<4x128xf32, #tpu.memory_space<vmem>>, %arg2: memref<128x128xf32, #tpu.memory_space<vmem>>, %arg3: memref<1x128xf32, #tpu.memory_space<vmem>>, %arg4: memref<128x128xf32, #tpu.memory_space<vmem>>, %arg5: memref<1x128xf32, #tpu.memory_space<vmem>>, %arg6: memref<4x128xf32, #tpu.memory_space<vmem>>) attributes {dimension_semantics = [#tpu.dimension_semantics<parallel>], iteration_bounds = array<i64: 1>, scalar_prefetch = 0 : i64, scratch_operands = 0 : i64, tpu.core_type = #tpu.core_type<tc>, window_params = [{transform_indices = @transform_0, window_bounds = array<i64: 4, 128>}, {pipeline_mode = #tpu.pipeline_mode<synchronous>, transform_indices = @transform_1, window_bounds = array<i64: 128, 128>}, {pipeline_mode = #tpu.pipeline_mode<synchronous>, transform_indices = @transform_2, window_bounds = array<i64: 1, 128>}, {pipeline_mode = #tpu.pipeline_mode<synchronous>, transform_indices = @transform_3, window_bounds = array<i64: 128, 128>}, {pipeline_mode = #tpu.pipeline_mode<synchronous>, transform_indices = @transform_4, window_bounds = array<i64: 1, 128>}, {transform_indices = @transform_5, window_bounds = array<i64: 4, 128>}]} {
    %c0 = arith.constant 0 : index
    %c0_0 = arith.constant 0 : index
    %0 = vector.load %arg1[%c0, %c0_0] : memref<4x128xf32, #tpu.memory_space<vmem>>, vector<4x128xf32>
    %c0_1 = arith.constant 0 : index
    %c0_2 = arith.constant 0 : index
    %1 = vector.load %arg2[%c0_1, %c0_2] : memref<128x128xf32, #tpu.memory_space<vmem>>, vector<128x128xf32>
    %cst = arith.constant dense<0.000000e+00> : vector<4x128xf32>
    %2 = tpu.matmul %0, %1, %cst {dimension_numbers = #tpu.dot_dimension_numbers<[1], [0], [0], [1], [0, 0, 1, 1], [], []>} : vector<4x128xf32>, vector<128x128xf32>, vector<4x128xf32> -> vector<4x128xf32>
    %c0_3 = arith.constant 0 : index
    %c0_4 = arith.constant 0 : index
    %3 = vector.load %arg3[%c0_3, %c0_4] : memref<1x128xf32, #tpu.memory_space<vmem>>, vector<1x128xf32>
    %4 = vector.broadcast %3 : vector<1x128xf32> to vector<4x128xf32>
    %5 = arith.addf %2, %4 : vector<4x128xf32>
    %cst_5 = arith.constant 0.000000e+00 : f32
    %6 = vector.broadcast %cst_5 : f32 to vector<4x128xf32>
    %7 = arith.maximumf %5, %6 : vector<4x128xf32>
    %c0_6 = arith.constant 0 : index
    %c0_7 = arith.constant 0 : index
    %8 = vector.load %arg4[%c0_6, %c0_7] : memref<128x128xf32, #tpu.memory_space<vmem>>, vector<128x128xf32>
    %cst_8 = arith.constant dense<0.000000e+00> : vector<4x128xf32>
    %9 = tpu.matmul %7, %8, %cst_8 {dimension_numbers = #tpu.dot_dimension_numbers<[1], [0], [0], [1], [0, 0, 1, 1], [], []>} : vector<4x128xf32>, vector<128x128xf32>, vector<4x128xf32> -> vector<4x128xf32>
    %c0_9 = arith.constant 0 : index
    %c0_10 = arith.constant 0 : index
    %10 = vector.load %arg5[%c0_9, %c0_10] : memref<1x128xf32, #tpu.memory_space<vmem>>, vector<1x128xf32>
    %11 = vector.broadcast %10 : vector<1x128xf32> to vector<4x128xf32>
    %12 = arith.addf %9, %11 : vector<4x128xf32>
    %13 = tpu.iota {dimensions = array<i32: 1>} : vector<1x128xi32>
    %c32_i32 = arith.constant 32 : i32
    %c0_i32 = arith.constant 0 : i32
    %14 = arith.cmpi eq, %c32_i32, %c0_i32 : i32
    %c1_i32 = arith.constant 1 : i32
    %15 = arith.select %14, %c1_i32, %c32_i32 : i32
    %16 = vector.broadcast %15 : i32 to vector<1x128xi32>
    %17 = arith.remsi %13, %16 : vector<1x128xi32>
    %c0_i32_11 = arith.constant 0 : i32
    %18 = vector.broadcast %c0_i32_11 : i32 to vector<1x128xi32>
    %19 = arith.cmpi ne, %17, %18 : vector<1x128xi32>
    %c0_i32_12 = arith.constant 0 : i32
    %20 = vector.broadcast %c0_i32_12 : i32 to vector<1x128xi32>
    %21 = arith.cmpi slt, %17, %20 : vector<1x128xi32>
    %c0_i32_13 = arith.constant 0 : i32
    %22 = arith.cmpi slt, %15, %c0_i32_13 : i32
    %23 = vector.broadcast %22 : i1 to vector<1x128xi1>
    %24 = vector.broadcast %23 : vector<1x128xi1> to vector<1x128xi1>
    %25 = arith.xori %21, %24 : vector<1x128xi1>
    %26 = arith.andi %25, %19 : vector<1x128xi1>
    %27 = vector.broadcast %15 : i32 to vector<1x128xi32>
    %28 = arith.addi %17, %27 : vector<1x128xi32>
    %29 = arith.select %26, %28, %17 : vector<1x128xi1>, vector<1x128xi32>
    %c16_i32 = arith.constant 16 : i32
    %30 = vector.broadcast %c16_i32 : i32 to vector<1x128xi32>
    %31 = arith.cmpi sge, %29, %30 : vector<1x128xi32>
    %32 = math.tanh %12 : vector<4x128xf32>
    %33 = vector.shape_cast %31 : vector<1x128xi1> to vector<1x128xi1>
    %34 = vector.broadcast %33 : vector<1x128xi1> to vector<4x128xi1>
    %35 = arith.select %34, %32, %12 : vector<4x128xi1>, vector<4x128xf32>
    %c0_14 = arith.constant 0 : index
    %c0_15 = arith.constant 0 : index
    %36 = vector.load %arg6[%c0_14, %c0_15] : memref<4x128xf32, #tpu.memory_space<vmem>>, vector<4x128xf32>
    tpu.vector_store %arg6[%c0_14, %c0_15], %35 {strides = array<i32>} : memref<4x128xf32, #tpu.memory_space<vmem>>, vector<4x128xf32>,
    return
  }
  func.func @transform_0(%arg0: i32) -> (i32, i32) {
    %c0_i32 = arith.constant 0 : i32
    %c0_i32_0 = arith.constant 0 : i32
    return %arg0, %c0_i32 : i32, i32
  }
  func.func @transform_1(%arg0: i32) -> (i32, i32) {
    %c0_i32 = arith.constant 0 : i32
    %c0_i32_0 = arith.constant 0 : i32
    %c0_i32_1 = arith.constant 0 : i32
    return %c0_i32, %c0_i32_0 : i32, i32
  }
  func.func @transform_2(%arg0: i32) -> (i32, i32) {
    %c0_i32 = arith.constant 0 : i32
    %c0_i32_0 = arith.constant 0 : i32
    %c0_i32_1 = arith.constant 0 : i32
    return %c0_i32, %c0_i32_0 : i32, i32
  }
  func.func @transform_3(%arg0: i32) -> (i32, i32) {
    %c0_i32 = arith.constant 0 : i32
    %c0_i32_0 = arith.constant 0 : i32
    %c0_i32_1 = arith.constant 0 : i32
    return %c0_i32, %c0_i32_0 : i32, i32
  }
  func.func @transform_4(%arg0: i32) -> (i32, i32) {
    %c0_i32 = arith.constant 0 : i32
    %c0_i32_0 = arith.constant 0 : i32
    %c0_i32_1 = arith.constant 0 : i32
    return %c0_i32, %c0_i32_0 : i32, i32
  }
  func.func @transform_5(%arg0: i32) -> (i32, i32) {
    %c0_i32 = arith.constant 0 : i32
    %c0_i32_0 = arith.constant 0 : i32
    return %arg0, %c0_i32 : i32, i32
  }
}

</mosaic_0001>

<bundles_post_ra>
// kernel: tpu_custom_call.1
= control target key start
LH: loop header
LB: loop body
LE: loop exit
PB: predicated region body
PF: predicated region fallthrough
CT: control target
= control target key end

     0   :  { %10 = vsyncpa [#allocation3], 0  ;;  %s658_s0 = inlined_call_operand.hbm [shape: f32[4,128], index: 0, kind: input, shape index: {}]   ;;  %s659_s1 = inlined_call_operand.hbm [shape: f32[128,128], index: 1, kind: input, shape index: {}]   ;;  %s660_s2 = inlined_call_operand.vmem [shape: f32[1,128], index: 2, kind: input, shape index: {}]   ;;  %s661_s3 = inlined_call_operand.hbm [shape: f32[128,128], index: 3, kind: input, shape index: {}]   ;;  %s662_s4 = inlined_call_operand.vmem [shape: f32[1,128], index: 4, kind: input, shape index: {}]   ;;  %s663_s5 = inlined_call_operand.hbm [shape: f32[4,128], index: 5, kind: output, shape index: {}]  }
   0x1   :  { %11 = vsyncpa [#allocation6], 0 }
   0x2   :  { %12 = vsyncpa [#allocation4], 0  ;;  %s543_s18 = smov [#allocation5]   ;;  %s449_s22 = scalar_lea.hbm %s659_s1, 2048 }
   0x3   :  { %s28_s19 = sshll.u32 %s543_s18, 4  ;;  %p450_p0 = scmp.ne.s32.totalorder %s659_s1, %s449_s22  ;;  %s29_s19 = int_to_ptr.vmem [resolvable:$true] %s28_s19 }
   0x4   :  { %p453_p1 = scmp.lt.u32.totalorder %s449_s22, %s659_s1 }
   0x6   :  { %p455_p2 = pnand %p453_p1, %p450_p0 }
   0x8   :  { %458 = shalt.err (!%p455_p2)
}
   0x9   :  { %s459_s27 = scalar_lea.vmem %s29_s19, 2048  ;;  %p464_p4 = scmp.lt.s32.totalorder %s29_s19, %s29_s19 }
   0xa   :  { %p460_p3 = scmp.ne.s32.totalorder %s29_s19, %s459_s27  ;;  %p465_p5 = scmp.lt.s32.totalorder %s459_s27, %s459_s27 }
   0xc   :  { %p466_p6 = por %p465_p5, %p464_p4 }
   0xe   :  { %p467_p7 = pnand %p466_p6, %p460_p3 }
  0x10   :  { %470 = shalt.err (!%p467_p7)
}
  0x11   :  { %s544_s28 = smov 128   ;;  %s545_s29 = smov 8  }
  0x12   :  { %34 = dma.hbm_to_vmem [thread:$0]  %s659_s1, 2048, %s29_s19, [#allocation6], %s544_s28, %s544_s28, %s545_s29  }
  0x13   :  { %s546_s7 = smov [#allocation2]   ;;  %s547_s9 = smov [#allocation7]  }
  0x14   :  { %s19_s8 = sshll.u32 %s546_s7, 4  ;;  %s42_s10 = sshll.u32 %s547_s9, 4  ;;  %s20_s8 = int_to_ptr.vmem [resolvable:$true] %s19_s8  ;;  %s43_s10 = int_to_ptr.vmem [resolvable:$true] %s42_s10 }
  0x15   :  { %s471_s13 = scalar_lea.hbm %s658_s0, 64 }
  0x16   :  { %p472_p8 = scmp.ne.s32.totalorder %s658_s0, %s471_s13  ;;  %p475_p9 = scmp.lt.u32.totalorder %s471_s13, %s658_s0 }
  0x18   :  { %p477_p10 = pnand %p475_p9, %p472_p8 }
  0x1a   :  { %480 = shalt.err (!%p477_p10)
}
  0x1b   :  { %s481_s1 = scalar_lea.vmem %s20_s8, 64  ;;  %p486_p12 = scmp.lt.s32.totalorder %s20_s8, %s20_s8 }
  0x1c   :  { %p482_p11 = scmp.ne.s32.totalorder %s20_s8, %s481_s1  ;;  %p487_p13 = scmp.lt.s32.totalorder %s481_s1, %s481_s1 }
  0x1e   :  { %p488_p0 = por %p487_p13, %p486_p12 }
  0x20   :  { %p489_p1 = pnand %p488_p0, %p482_p11 }
  0x22   :  { %492 = shalt.err (!%p489_p1)
}
  0x23   :  { %22 = dma.hbm_to_vmem [thread:$0]  %s658_s0, 64, %s20_s8, [#allocation3]  }
  0x24   :  { %s493_s22 = scalar_lea.hbm %s661_s3, 2048 }
  0x25   :  { %p494_p2 = scmp.ne.s32.totalorder %s661_s3, %s493_s22  ;;  %p497_p3 = scmp.lt.u32.totalorder %s493_s22, %s661_s3 }
  0x27   :  { %p499_p4 = pnand %p497_p3, %p494_p2 }
  0x29   :  { %502 = shalt.err (!%p499_p4)
}
  0x2a   :  { %s503_s27 = scalar_lea.vmem %s43_s10, 2048  ;;  %p508_p6 = scmp.lt.s32.totalorder %s43_s10, %s43_s10 }
  0x2b   :  { %p504_p5 = scmp.ne.s32.totalorder %s43_s10, %s503_s27  ;;  %p509_p7 = scmp.lt.s32.totalorder %s503_s27, %s503_s27 }
  0x2d   :  { %p510_p8 = por %p509_p7, %p508_p6 }
  0x2f   :  { %p511_p9 = pnand %p510_p8, %p504_p5 }
  0x31   :  { %514 = shalt.err (!%p511_p9)
}
  0x32   :  { %48 = dma.hbm_to_vmem [thread:$0]  %s661_s3, 2048, %s43_s10, [#allocation6], %s544_s28, %s544_s28, %s545_s29  }
  0x33   :  { %537 = dma.done.wait [#allocation3], 64  }
  0x34   :  { %538 = vsyncadd [#allocation3], 4294967232 }
  0x35   :  { %539 = dma.done.wait [#allocation6], 4096  }
  0x36   :  { %540 = vsyncadd [#allocation6], 4294963200  ;;  %v548_v0 = vmov 0.0|0.0   ;;  %vm549_vm0 = vmmov 0   ;;  %v550_v1 = vmov 0.0   ;;  %v61_v2 = vld [vmem:[#allocation5] sm:$0xff]  ;;  %v248_v57 = vlaneseq }
  0x37   :  { %390 = vmatprep.subr.bf16.mxu0 %v548_v0  ;;  %352 = vmatprep.mubr.msk.f32.mxu0 %vm549_vm0, %v550_v1  ;;  %v62_v3 = vld [vmem:[#allocation5 + $0x8] sm:$0xff]  ;;  %v63_v4 = vld [vmem:[#allocation5 + $0x10] sm:$0xff]  ;;  %v64_v6 = vld [vmem:[#allocation5 + $0x18] sm:$0xff]  ;;  %s551_s7 = smov [#allocation8]  }
  0x38   :  { %414 = vmatprep.subr.bf16.mxu1 %v548_v0  ;;  %387 = vmatprep.mubr.msk.f32.mxu1 %vm549_vm0, %v550_v1  ;;  %v391_v5 = vpack.c.bf16 %v62_v3, %v61_v2  ;;  %v394_v7 = vpack.c.bf16 %v64_v6, %v63_v4  ;;  %v65_v8 = vld [vmem:[#allocation5 + $0x20] sm:$0xff]  ;;  %v66_v9 = vld [vmem:[#allocation5 + $0x28] sm:$0xff]  ;;  %v157_v12 = vld [vmem:[#allocation7 + $0x10] sm:$0xff]  ;;  %v249_v61 = vand.u32 127, %v248_v57  ;;  %s274_s8 = sshll.u32 %s551_s7, 4  ;;  %s275_s8 = int_to_ptr.vmem [resolvable:$true] %s274_s8 }
  0x39   :  { %v155_v10 = vld [vmem:[#allocation7] sm:$0xff]  ;;  %v156_v11 = vld [vmem:[#allocation7 + $0x8] sm:$0xff]  ;;  %v158_v13 = vld [vmem:[#allocation7 + $0x18] sm:$0xff]  ;;  %v397_v14 = vpack.c.bf16 %v66_v9, %v65_v8  ;;  %p520_p11 = scmp.lt.s32.totalorder %s275_s8, %s275_s8 }
  0x3a   :  { %392 = vmatpush3.bf16.msra.mxu0 %v391_v5  ;;  %v415_v15 = vpack.c.bf16 %v156_v11, %v155_v10  ;;  %v67_v16 = vld [vmem:[#allocation5 + $0x30] sm:$0xff]  ;;  %v68_v17 = vld [vmem:[#allocation5 + $0x38] sm:$0xff]  ;;  %v418_v18 = vpack.c.bf16 %v158_v13, %v157_v12  ;;  %v159_v19 = vld [vmem:[#allocation7 + $0x20] sm:$0xff]  ;;  %v254_v62 = vand.u32 31, %v249_v61 }
  0x3b   :  { %393 = vmatprep.subr.bf16.mxu0 %v548_v0  ;;  %v160_v20 = vld [vmem:[#allocation7 + $0x28] sm:$0xff]  ;;  %v400_v21 = vpack.c.bf16 %v68_v17, %v67_v16  ;;  %v69_v22 = vld [vmem:[#allocation5 + $0x40] sm:$0xff]  ;;  %v161_v25 = vld [vmem:[#allocation7 + $0x30] sm:$0xff] }
  0x3c   :  { %416 = vmatpush3.bf16.msra.mxu1 %v415_v15  ;;  %v70_v23 = vld [vmem:[#allocation5 + $0x48] sm:$0xff]  ;;  %v421_v24 = vpack.c.bf16 %v160_v20, %v159_v19  ;;  %v162_v26 = vld [vmem:[#allocation7 + $0x38] sm:$0xff]  ;;  %v71_v28 = vld [vmem:[#allocation5 + $0x50] sm:$0xff]  ;;  %vm262_vm1 = vcmp.ge.s32.totalorder %v254_v62, 16 }
  0x3d   :  { %417 = vmatprep.subr.bf16.mxu1 %v548_v0  ;;  %v403_v27 = vpack.c.bf16 %v70_v23, %v69_v22  ;;  %v72_v29 = vld [vmem:[#allocation5 + $0x58] sm:$0xff]  ;;  %v424_v30 = vpack.c.bf16 %v162_v26, %v161_v25  ;;  %v163_v31 = vld [vmem:[#allocation7 + $0x40] sm:$0xff]  ;;  %v164_v32 = vld [vmem:[#allocation7 + $0x48] sm:$0xff] }
  0x3e   :  { %395 = vmatpush3.bf16.msra.mxu0 %v394_v7  ;;  %v406_v33 = vpack.c.bf16 %v72_v29, %v71_v28  ;;  %v73_v34 = vld [vmem:[#allocation5 + $0x60] sm:$0xff]  ;;  %v74_v35 = vld [vmem:[#allocation5 + $0x68] sm:$0xff]  ;;  %v427_v36 = vpack.c.bf16 %v164_v32, %v163_v31  ;;  %v165_v37 = vld [vmem:[#allocation7 + $0x50] sm:$0xff] }
  0x3f   :  { %396 = vmatprep.subr.bf16.mxu0 %v548_v0  ;;  %v166_v38 = vld [vmem:[#allocation7 + $0x58] sm:$0xff]  ;;  %v409_v39 = vpack.c.bf16 %v74_v35, %v73_v34  ;;  %v75_v40 = vld [vmem:[#allocation5 + $0x70] sm:$0xff]  ;;  %v167_v43 = vld [vmem:[#allocation7 + $0x60] sm:$0xff] }
  0x40   :  { %419 = vmatpush3.bf16.msra.mxu1 %v418_v18  ;;  %v76_v41 = vld [vmem:[#allocation5 + $0x78] sm:$0xff]  ;;  %v430_v42 = vpack.c.bf16 %v166_v38, %v165_v37  ;;  %v168_v44 = vld [vmem:[#allocation7 + $0x68] sm:$0xff]  ;;  %v169_v48 = vld [vmem:[#allocation7 + $0x70] sm:$0xff] }
  0x41   :  { %420 = vmatprep.subr.bf16.mxu1 %v548_v0  ;;  %v412_v45 = vpack.c.bf16 %v76_v41, %v75_v40  ;;  %v433_v46 = vpack.c.bf16 %v168_v44, %v167_v43  ;;  %v60_v47 = vld [vmem:[#allocation2] sm:$0xf] }
  0x42   :  { %398 = vmatpush3.bf16.msra.mxu0 %v397_v14  ;;  %v170_v49 = vld [vmem:[#allocation7 + $0x78] sm:$0xff] }
  0x43   :  { %399 = vmatprep.subr.bf16.mxu0 %v548_v0  ;;  %v436_v50 = vpack.c.bf16 %v170_v49, %v169_v48  ;;  %v284_v51 = vld [vmem:[%s660_s2] ss:$0 sm:$0xff]  ;;  %s515_s2 = scalar_lea.vmem %s275_s8, 64 }
  0x44   :  { %422 = vmatpush3.bf16.msra.mxu1 %v421_v24  ;;  %v285_v56 = vld [vmem:[%s662_s4] ss:$0 sm:$0xff]  ;;  %p516_p10 = scmp.ne.s32.totalorder %s275_s8, %s515_s2  ;;  %p521_p12 = scmp.lt.s32.totalorder %s515_s2, %s515_s2 }
  0x45   :  { %423 = vmatprep.subr.bf16.mxu1 %v548_v0 }
  0x46   :  { %401 = vmatpush3.bf16.msra.mxu0 %v400_v21  ;;  %p522_p13 = por %p521_p12, %p520_p11 }
  0x47   :  { %402 = vmatprep.subr.bf16.mxu0 %v548_v0 }
  0x48   :  { %425 = vmatpush3.bf16.msra.mxu1 %v424_v30  ;;  %p523_p0 = pnand %p522_p13, %p516_p10 }
  0x49   :  { %426 = vmatprep.subr.bf16.mxu1 %v548_v0 }
  0x4a   :  { %404 = vmatpush3.bf16.msra.mxu0 %v403_v27 }
  0x4b   :  { %405 = vmatprep.subr.bf16.mxu0 %v548_v0 }
  0x4c   :  { %428 = vmatpush3.bf16.msra.mxu1 %v427_v36 }
  0x4d   :  { %429 = vmatprep.subr.bf16.mxu1 %v548_v0 }
  0x4e   :  { %407 = vmatpush3.bf16.msra.mxu0 %v406_v33 }
  0x4f   :  { %408 = vmatprep.subr.bf16.mxu0 %v548_v0 }
  0x50   :  { %431 = vmatpush3.bf16.msra.mxu1 %v430_v42 }
  0x51   :  { %432 = vmatprep.subr.bf16.mxu1 %v548_v0 }
  0x52   :  { %410 = vmatpush3.bf16.msra.mxu0 %v409_v39 }
  0x53   :  { %411 = vmatprep.subr.bf16.mxu0 %v548_v0 }
  0x54   :  { %434 = vmatpush3.bf16.msra.mxu1 %v433_v46 }
  0x55   :  { %435 = vmatprep.subr.bf16.mxu1 %v548_v0 }
  0x56   :  { %413 = vmatpush3.bf16.msra.mxu0 %v412_v45 }
  0x58   :  { %437 = vmatpush3.bf16.msra.mxu1 %v436_v50 }
  0x59   :  { %353 = vmatmul.mubr.f32.vlgmr.msra.gmra.mrb[0].mxu0 %v60_v47 }
 0x12c   :  { %v150_v52 = vpop.f32.mrb[0].mxu0 }
 0x12d   :  { %v151_v53 = vadd.f32 %v284_v51, %v150_v52  ;;  %v354_v54 = vpop.f32.mrb[1].mxu0 }
 0x12f   :  { %v154_v55 = vmax.f32 %v151_v53, 0.0 }
 0x131   :  { %388 = vmatmul.mubr.f32.vlgmr.msra.gmra.mrb[0].mxu1 %v154_v55 }
 0x204   :  { %v244_v58 = vpop.f32.mrb[0].mxu1 }
 0x205   :  { %v245_v59 = vadd.f32 %v285_v56, %v244_v58  ;;  %v389_v60 = vpop.f32.mrb[1].mxu1 }
 0x207   :  { %447 = vtanh.f32 %v245_v59 }
 0x211   :  { %v448_v63 = vpop.eup %447 }
 0x212   :  { %v266_v0 = vsel %vm262_vm1, %v448_v63, %v245_v59 }
 0x213   :  { %267 = vst [vmem:[#allocation8] sm:$0xf] %v266_v0 }
 0x214   :  { %526 = shalt.err (!%p523_p0)
}
 0x215   :  { %s527_s10 = scalar_lea.hbm %s663_s5, 64 }
 0x216   :  { %p528_p1 = scmp.ne.s32.totalorder %s663_s5, %s527_s10  ;;  %p531_p2 = scmp.lt.u32.totalorder %s527_s10, %s663_s5 }
 0x218   :  { %p533_p3 = pnand %p531_p2, %p528_p1 }
 0x21a   :  { %536 = shalt.err (!%p533_p3)
}
 0x21b   :  { %277 = dma.vmem_to_hbm [thread:$0]  %s275_s8, 64, %s663_s5, [#allocation4]  }
 0x21c   :  { %541 = dma.done.wait [#allocation4], 64  }
 0x21d   :  { %542 = vsyncadd [#allocation4], 4294967232 }
 0x21e   :  { %281 = vsyncpa [#allocation3], 1 }
 0x21f   :  { %282 = vsyncpa [#allocation6], 1 }
 0x220   :  { %283 = vsyncpa [#allocation4], 1 }

</bundles_post_ra>
